<compile_context>
chip_gen: v6e
topology: v6e:2x2x1
jax: 0.10.0
libtpu: 0.0.40
codegen_flags: <defaults>
</compile_context>

<pallas_src>
import functools

import numpy as np
import jax
import jax.numpy as jnp
from jax import lax
from jax.experimental import pallas as pl
from jax.experimental.pallas import tpu as pltpu


# ---------------------------------------------------------------------------
# Host-side pooling-matrix construction (cached per shape/dtype).
# ---------------------------------------------------------------------------

def _adaptive_pool_matrix(in_size: int, out_size: int) -> np.ndarray:
    """Row i averages PyTorch's adaptive bin [floor(i*I/O), ceil((i+1)*I/O))."""
    m = np.zeros((out_size, in_size), dtype=np.float32)
    for i in range(out_size):
        start = (i * in_size) // out_size
        end = -(-((i + 1) * in_size) // out_size)  # ceil division
        m[i, start:end] = 1.0 / float(end - start)
    return m


def _avgpool_matrix(in_size: int, kernel: int, stride: int, padding: int) -> np.ndarray:
    """AvgPool2d 1-D factor, count_include_pad=True (PyTorch default)."""
    out_size = (in_size + 2 * padding - kernel) // stride + 1
    m = np.zeros((out_size, in_size), dtype=np.float32)
    for i in range(out_size):
        start = i * stride - padding
        end = start + kernel
        lo, hi = max(start, 0), min(end, in_size)
        m[i, lo:hi] = 1.0 / float(kernel)       # padded zeros contribute nothing
    return m


def _upload_kron_t(A: np.ndarray, B: np.ndarray, oo_pad: int, dtype_name: str):
    """M^T with M = kron(A, B); columns zero-padded to oo_pad (lane density)."""
    M = np.kron(A, B)                           # (Oh*Ow, H*W)
    mt = np.ascontiguousarray(M.T)              # (H*W, Oh*Ow)
    oo = mt.shape[1]
    if oo_pad > oo:
        mt = np.pad(mt, ((0, 0), (0, oo_pad - oo)))
    return jnp.asarray(mt, dtype=jnp.dtype(dtype_name))


@functools.lru_cache(maxsize=None)
def _adaptive_mt_device(h, w, out_size, oo_pad, dtype_name):
    return _upload_kron_t(_adaptive_pool_matrix(h, out_size),
                          _adaptive_pool_matrix(w, out_size),
                          oo_pad, dtype_name)


@functools.lru_cache(maxsize=None)
def _avgpool_mt_device(h, w, kernel, stride, padding, oo_pad, dtype_name):
    return _upload_kron_t(_avgpool_matrix(h, kernel, stride, padding),
                          _avgpool_matrix(w, kernel, stride, padding),
                          oo_pad, dtype_name)


# ---------------------------------------------------------------------------
# Kernel + tiling policy.
# ---------------------------------------------------------------------------

def _pool_matmul_kernel(mt_ref, x_ref, o_ref):
    # mt_ref: (HW, OO_pad) resident; x_ref: (P, HW); o_ref: (P, OO_pad)
    o_ref[...] = jnp.dot(
        x_ref[...], mt_ref[...], preferred_element_type=jnp.float32
    ).astype(o_ref.dtype)


def _sublane_pack(dtype) -> int:
    """Sublane packing granularity for the dtype (rows per packed vreg tile)."""
    return {4: 8, 2: 16, 1: 32}.get(jnp.dtype(dtype).itemsize, 8)


def _choose_plane_batch(rows, hw, oo_pad, in_itemsize, out_itemsize,
                        mat_itemsize, pack):
    """Pick the plane-batch P and the VMEM limit for this chip generation."""
    try:
        vmem_cap = pltpu.get_tpu_info().vmem_capacity_bytes
    except Exception:
        vmem_cap = 64 * (1 << 20)               # conservative (v7x-like) default

    if vmem_cap >= 96 * (1 << 20):              # v5e / v6e: 128 MiB physical VMEM
        budget, vmem_limit = 56 * (1 << 20), 64 * (1 << 20)
    else:                                       # v7x: 64 MiB physical VMEM
        budget, vmem_limit = 40 * (1 << 20), 48 * (1 << 20)

    # 2x double-buffered input/output blocks + (<= 2x) resident pool matrix.
    mat_bytes = 2 * hw * oo_pad * mat_itemsize
    per_row = 2 * (hw * in_itemsize + oo_pad * out_itemsize)
    p = (budget - mat_bytes) // per_row
    p = max(pack, min(int(p), 8192))
    p = (p // pack) * pack

    if p >= rows:
        if rows >= 4 * pack:
            # Split into >= 2 balanced blocks so both v7x TensorCores get work
            # (one extra ~0.35us grid step on single-TC chips: negligible).
            half = -(-rows // 2)
            p = -(-half // pack) * pack
        else:
            p = rows                            # single full block (dim == array dim)
    elif rows % p != 0:
        # Prefer a divisor of rows near the budget-derived P so there is no
        # ragged, masked last block; otherwise keep P (partial block is fine,
        # rows are independent and the OOB tail is masked on store).
        for cand in range(p, max(pack, p // 2) - 1, -pack):
            if rows % cand == 0:
                p = cand
                break
    return p, vmem_limit


def _pooled_matmul(x: jnp.ndarray, mt: jnp.ndarray, oh: int, ow: int) -> jnp.ndarray:
    """x: (N, C, H, W); mt: (H*W, OO_pad). Returns (N, C, oh, ow)."""
    N, C, H, W = x.shape
    HW = H * W
    OO = oh * ow
    OO_pad = mt.shape[1]
    rows = N * C

    in_itemsize = jnp.dtype(x.dtype).itemsize
    mat_itemsize = jnp.dtype(mt.dtype).itemsize
    pack = _sublane_pack(x.dtype)
    P, vmem_limit = _choose_plane_batch(rows, HW, OO_pad, in_itemsize,
                                        in_itemsize, mat_itemsize, pack)
    num_blocks = pl.cdiv(rows, P)

    x_flat = x.reshape(rows, HW)                # contiguous reshape, no copy

    cost = pl.CostEstimate(
        flops=2 * rows * HW * OO_pad,
        transcendentals=0,
        bytes_accessed=rows * (HW + OO_pad) * in_itemsize + HW * OO_pad * mat_itemsize,
    )

    def run(single_buffer_mt):
        mt_kwargs = {"pipeline_mode": pl.Buffered(1)} if single_buffer_mt else {}
        return pl.pallas_call(
            _pool_matmul_kernel,
            out_shape=jax.ShapeDtypeStruct((rows, OO_pad), x.dtype),
            grid_spec=pltpu.PrefetchScalarGridSpec(
                num_scalar_prefetch=0,
                grid=(num_blocks,),
                in_specs=[
                    # Resident pool matrix: constant index_map, single-buffered.
                    pl.BlockSpec((HW, OO_pad), lambda i: (0, 0), **mt_kwargs),
                    # P contiguous planes per step: lane-dense (P, HW) DMA.
                    pl.BlockSpec((P, HW), lambda i: (i, 0)),
                ],
                out_specs=pl.BlockSpec((P, OO_pad), lambda i: (i, 0)),
            ),
            compiler_params=pltpu.CompilerParams(
                dimension_semantics=("parallel",),
                vmem_limit_bytes=vmem_limit,
            ),
            cost_estimate=cost,
        )(mt, x_flat)

    try:
        out = run(True)
    except Exception:
        # pl.Buffered(1) not supported on this JAX version -> default buffering.
        out = run(False)

    if OO_pad != OO:
        out = out[:, :OO]                       # tiny output-only slice
    return out.reshape(N, C, oh, ow)


# ---------------------------------------------------------------------------
# Public pooling ops + module wrapper.
# ---------------------------------------------------------------------------

def adaptive_avg_pool2d_pallas(x: jnp.ndarray, out_size: int) -> jnp.ndarray:
    """Matches nn.AdaptiveAvgPool2d(out_size) on (N, C, H, W) inputs."""
    N, C, H, W = x.shape
    OO = out_size * out_size
    OO_pad = OO if OO >= 128 else 128
    mat_dtype = jnp.bfloat16 if x.dtype == jnp.bfloat16 else jnp.float32
    mt = _adaptive_mt_device(H, W, out_size, OO_pad, jnp.dtype(mat_dtype).name)
    return _pooled_matmul(x, mt, out_size, out_size)


def avg_pool2d_pallas(x: jnp.ndarray, kernel_size: int, stride: int,
                      padding: int = 0) -> jnp.ndarray:
    """Matches nn.AvgPool2d(kernel_size, stride, padding) (count_include_pad=True)."""
    N, C, H, W = x.shape
    oh = (H + 2 * padding - kernel_size) // stride + 1
    ow = (W + 2 * padding - kernel_size) // stride + 1
    OO = oh * ow
    OO_pad = OO if OO >= 128 else 128
    mat_dtype = jnp.bfloat16 if x.dtype == jnp.bfloat16 else jnp.float32
    mt = _avgpool_mt_device(H, W, kernel_size, stride, padding, OO_pad,
                            jnp.dtype(mat_dtype).name)
    return _pooled_matmul(x, mt, oh, ow)


class CustomMultiPoolingPallas:
    """Pallas equivalent of gaiassl CustomMultiPooling."""

    POOL_PARAMS = {'i224-s5': [dict(kernel_size=10, stride=10, padding=4),
                               dict(kernel_size=16, stride=8, padding=0),
                               dict(kernel_size=13, stride=5, padding=0),
                               dict(kernel_size=8, stride=3, padding=0),
                               dict(kernel_size=6, stride=1, padding=0)]}
    POOL_SIZES = {'i224-s5': [12, 6, 4, 3, 2]}

    def __init__(self, pool_type='adaptive', in_indices=(0,), backbone='i224-s5'):
        assert pool_type in ('adaptive', 'specified')
        self.pool_type = pool_type
        if pool_type == 'adaptive':
            self.pool_args = [self.POOL_SIZES[backbone][l] for l in in_indices]
        else:
            self.pool_args = [self.POOL_PARAMS[backbone][l] for l in in_indices]

    def __call__(self, xs):
        assert isinstance(xs, (list, tuple))
        if self.pool_type == 'adaptive':
            return [adaptive_avg_pool2d_pallas(xx, s)
                    for s, xx in zip(self.pool_args, xs)]
        return [avg_pool2d_pallas(xx, **p)
                for p, xx in zip(self.pool_args, xs)]


# ---------------------------------------------------------------------------
# Pure-JAX references.
# ---------------------------------------------------------------------------

def _reference_adaptive_avg_pool2d(x, out_size):
    A = jnp.asarray(_adaptive_pool_matrix(x.shape[2], out_size))
    B = jnp.asarray(_adaptive_pool_matrix(x.shape[3], out_size))
    return jnp.einsum('oh,nchw,pw->ncop', A, x, B)


def _reference_avg_pool2d(x, kernel_size, stride, padding):
    s = lax.reduce_window(
        x, 0.0, lax.add,
        window_dimensions=(1, 1, kernel_size, kernel_size),
        window_strides=(1, 1, stride, stride),
        padding=[(0, 0), (0, 0), (padding, padding), (padding, padding)])
    return s / float(kernel_size * kernel_size)


if __name__ == "__main__":
    key = jax.random.PRNGKey(0)
    k0, k1, k2 = jax.random.split(key, 3)

    # Default module path: pool_type='adaptive', in_indices=(0,) -> 12x12.
    x0 = jax.random.normal(k0, (2, 4, 16, 16), dtype=jnp.float32)
    module = CustomMultiPoolingPallas(pool_type='adaptive', in_indices=(0,),
                                      backbone='i224-s5')
    outs = [jax.block_until_ready(o) for o in module([x0])]
    assert outs[0].shape == (2, 4, 12, 12), outs[0].shape
    np.testing.assert_allclose(np.asarray(outs[0]),
                               np.asarray(_reference_adaptive_avg_pool2d(x0, 12)),
                               rtol=1e-5, atol=1e-5)

    # Multi-block + ragged-tail path (rows = 40 -> blocks of 24 and 16).
    x1 = jax.random.normal(k1, (5, 8, 16, 16), dtype=jnp.float32)
    out1 = jax.block_until_ready(adaptive_avg_pool2d_pallas(x1, 12))
    np.testing.assert_allclose(np.asarray(out1),
                               np.asarray(_reference_adaptive_avg_pool2d(x1, 12)),
                               rtol=1e-5, atol=1e-5)

    # 'specified' path (AvgPool2d(10, 10, 4)) exercising the lane-padded
    # small-output (OO=4 -> 128 lanes) layout.
    x2 = jax.random.normal(k2, (2, 4, 16, 16), dtype=jnp.float32)
    mod2 = CustomMultiPoolingPallas(pool_type='specified', in_indices=(0,),
                                    backbone='i224-s5')
    out2 = jax.block_until_ready(mod2([x2])[0])
    np.testing.assert_allclose(np.asarray(out2),
                               np.asarray(_reference_avg_pool2d(x2, 10, 10, 4)),
                               rtol=1e-5, atol=1e-5)

    print("KERNEL_OK")
</pallas_src>

<mosaic_0001>
module attributes {stable_mosaic.version = 11 : i64} {
  func.func @_pool_matmul_kernel(%arg0: i32, %arg1: memref<256x144xf32, #tpu.memory_space<vmem>>, %arg2: memref<8x256xf32, #tpu.memory_space<vmem>>, %arg3: memref<8x144xf32, #tpu.memory_space<vmem>>) attributes {dimension_semantics = [#tpu.dimension_semantics<parallel>], iteration_bounds = array<i64: 1>, scalar_prefetch = 0 : i64, scratch_operands = 0 : i64, tpu.core_type = #tpu.core_type<tc>, window_params = [{pipeline_mode = #tpu.pipeline_mode<synchronous>, transform_indices = @transform_0, window_bounds = array<i64: 256, 144>}, {transform_indices = @transform_1, window_bounds = array<i64: 8, 256>}, {transform_indices = @transform_2, window_bounds = array<i64: 8, 144>}]} {
    %c0 = arith.constant 0 : index
    %c0_0 = arith.constant 0 : index
    %0 = vector.load %arg2[%c0, %c0_0] : memref<8x256xf32, #tpu.memory_space<vmem>>, vector<8x256xf32>
    %c0_1 = arith.constant 0 : index
    %c0_2 = arith.constant 0 : index
    %1 = vector.load %arg1[%c0_1, %c0_2] : memref<256x144xf32, #tpu.memory_space<vmem>>, vector<256x144xf32>
    %cst = arith.constant dense<0.000000e+00> : vector<8x144xf32>
    %2 = tpu.matmul %0, %1, %cst {dimension_numbers = #tpu.dot_dimension_numbers<[1], [0], [0], [1], [0, 0, 1, 1], [], []>} : vector<8x256xf32>, vector<256x144xf32>, vector<8x144xf32> -> vector<8x144xf32>
    %c0_3 = arith.constant 0 : index
    %c0_4 = arith.constant 0 : index
    %3 = vector.load %arg3[%c0_3, %c0_4] : memref<8x144xf32, #tpu.memory_space<vmem>>, vector<8x144xf32>
    tpu.vector_store %arg3[%c0_3, %c0_4], %2 {strides = array<i32>} : memref<8x144xf32, #tpu.memory_space<vmem>>, vector<8x144xf32>,
    return
  }
  func.func @transform_0(%arg0: i32) -> (i32, i32) {
    %c0_i32 = arith.constant 0 : i32
    %c0_i32_0 = arith.constant 0 : i32
    %c0_i32_1 = arith.constant 0 : i32
    return %c0_i32, %c0_i32_0 : i32, i32
  }
  func.func @transform_1(%arg0: i32) -> (i32, i32) {
    %c0_i32 = arith.constant 0 : i32
    %c0_i32_0 = arith.constant 0 : i32
    return %arg0, %c0_i32 : i32, i32
  }
  func.func @transform_2(%arg0: i32) -> (i32, i32) {
    %c0_i32 = arith.constant 0 : i32
    %c0_i32_0 = arith.constant 0 : i32
    return %arg0, %c0_i32 : i32, i32
  }
}

module attributes {stable_mosaic.version = 11 : i64} {
  func.func @_pool_matmul_kernel(%arg0: i32, %arg1: memref<256x144xf32, #tpu.memory_space<vmem>>, %arg2: memref<8x256xf32, #tpu.memory_space<vmem>>, %arg3: memref<8x144xf32, #tpu.memory_space<vmem>>) attributes {dimension_semantics = [#tpu.dimension_semantics<parallel>], iteration_bounds = array<i64: 1>, scalar_prefetch = 0 : i64, scratch_operands = 0 : i64, tpu.core_type = #tpu.core_type<tc>, window_params = [{pipeline_mode = #tpu.pipeline_mode<synchronous>, transform_indices = @transform_0, window_bounds = array<i64: 256, 144>}, {transform_indices = @transform_1, window_bounds = array<i64: 8, 256>}, {transform_indices = @transform_2, window_bounds = array<i64: 8, 144>}]} {
    %c0 = arith.constant 0 : index
    %c0_0 = arith.constant 0 : index
    %0 = vector.load %arg2[%c0, %c0_0] : memref<8x256xf32, #tpu.memory_space<vmem>>, vector<8x256xf32>
    %c0_1 = arith.constant 0 : index
    %c0_2 = arith.constant 0 : index
    %1 = vector.load %arg1[%c0_1, %c0_2] : memref<256x144xf32, #tpu.memory_space<vmem>>, vector<256x144xf32>
    %cst = arith.constant dense<0.000000e+00> : vector<8x144xf32>
    %2 = tpu.matmul %0, %1, %cst {dimension_numbers = #tpu.dot_dimension_numbers<[1], [0], [0], [1], [0, 0, 1, 1], [], []>} : vector<8x256xf32>, vector<256x144xf32>, vector<8x144xf32> -> vector<8x144xf32>
    %c0_3 = arith.constant 0 : index
    %c0_4 = arith.constant 0 : index
    %3 = vector.load %arg3[%c0_3, %c0_4] : memref<8x144xf32, #tpu.memory_space<vmem>>, vector<8x144xf32>
    tpu.vector_store %arg3[%c0_3, %c0_4], %2 {strides = array<i32>} : memref<8x144xf32, #tpu.memory_space<vmem>>, vector<8x144xf32>,
    return
  }
  func.func @transform_0(%arg0: i32) -> (i32, i32) {
    %c0_i32 = arith.constant 0 : i32
    %c0_i32_0 = arith.constant 0 : i32
    %c0_i32_1 = arith.constant 0 : i32
    return %c0_i32, %c0_i32_0 : i32, i32
  }
  func.func @transform_1(%arg0: i32) -> (i32, i32) {
    %c0_i32 = arith.constant 0 : i32
    %c0_i32_0 = arith.constant 0 : i32
    return %arg0, %c0_i32 : i32, i32
  }
  func.func @transform_2(%arg0: i32) -> (i32, i32) {
    %c0_i32 = arith.constant 0 : i32
    %c0_i32_0 = arith.constant 0 : i32
    return %arg0, %c0_i32 : i32, i32
  }
}

</mosaic_0001>

<bundles_post_ra>
// kernel: tpu_custom_call.1
= control target key start
LH: loop header
LB: loop body
LE: loop exit
PB: predicated region body
PF: predicated region fallthrough
CT: control target
= control target key end

     0   :  { %s406_s0 = inlined_call_operand.vmem [shape: f32[256,144], index: 0, kind: input, shape index: {}]   ;;  %s407_s1 = inlined_call_operand.vmem [shape: f32[8,256], index: 1, kind: input, shape index: {}]   ;;  %s408_s2 = inlined_call_operand.hbm [shape: f32[8,144], index: 2, kind: output, shape index: {}]  }
   0x1   :  { %v45_v0 = vld [vmem:[%s406_s0 + $0xf8] sm:$0xff]  ;;  %v44_v1 = vld [vmem:[%s406_s0 + $0xf0] sm:$0xff]  ;;  %v43_v2 = vld [vmem:[%s406_s0 + $0xe8] sm:$0xff] }
   0x2   :  { %78 = vmatprep.subr.mxu0 %v45_v0  ;;  %v42_v3 = vld [vmem:[%s406_s0 + $0xe0] sm:$0xff]  ;;  %v41_v4 = vld [vmem:[%s406_s0 + $0xd8] sm:$0xff]  ;;  %v40_v5 = vld [vmem:[%s406_s0 + $0xd0] sm:$0xff] }
   0x3   :  { %79 = vmatpush1.msra.mxu0 %v44_v1  ;;  %v39_v6 = vld [vmem:[%s406_s0 + $0xc8] sm:$0xff]  ;;  %v38_v7 = vld [vmem:[%s406_s0 + $0xc0] sm:$0xff]  ;;  %v37_v8 = vld [vmem:[%s406_s0 + $0xb8] sm:$0xff] }
   0x4   :  { %80 = vmatprep.subr.mxu0 %v43_v2  ;;  %v36_v9 = vld [vmem:[%s406_s0 + $0xb0] sm:$0xff]  ;;  %v35_v10 = vld [vmem:[%s406_s0 + $0xa8] sm:$0xff]  ;;  %v34_v11 = vld [vmem:[%s406_s0 + $0xa0] sm:$0xff] }
   0x5   :  { %81 = vmatpush1.msra.mxu0 %v42_v3  ;;  %v33_v12 = vld [vmem:[%s406_s0 + $0x98] sm:$0xff]  ;;  %v32_v13 = vld [vmem:[%s406_s0 + $0x90] sm:$0xff]  ;;  %v31_v14 = vld [vmem:[%s406_s0 + $0x88] sm:$0xff] }
   0x6   :  { %82 = vmatprep.subr.mxu0 %v41_v4  ;;  %v30_v15 = vld [vmem:[%s406_s0 + $0x80] sm:$0xff]  ;;  %v29_v16 = vld [vmem:[%s406_s0 + $0x78] sm:$0xff]  ;;  %v28_v17 = vld [vmem:[%s406_s0 + $0x70] sm:$0xff] }
   0x7   :  { %83 = vmatpush1.msra.mxu0 %v40_v5  ;;  %v27_v18 = vld [vmem:[%s406_s0 + $0x68] sm:$0xff]  ;;  %v26_v19 = vld [vmem:[%s406_s0 + $0x60] sm:$0xff]  ;;  %v25_v20 = vld [vmem:[%s406_s0 + $0x58] sm:$0xff] }
   0x8   :  { %84 = vmatprep.subr.mxu0 %v39_v6  ;;  %v24_v21 = vld [vmem:[%s406_s0 + $0x50] sm:$0xff]  ;;  %v23_v22 = vld [vmem:[%s406_s0 + $0x48] sm:$0xff]  ;;  %v22_v23 = vld [vmem:[%s406_s0 + $0x40] sm:$0xff] }
   0x9   :  { %85 = vmatpush1.msra.mxu0 %v38_v7  ;;  %v13_v24 = vld [vmem:[%s407_s1 + $0x8] sm:$0xff]  ;;  %v21_v25 = vld [vmem:[%s406_s0 + $0x38] sm:$0xff] }
   0xa   :  { %86 = vmatprep.subr.mxu0 %v37_v8  ;;  %142 = vmatprep.mubr.f32.mxu0 %v13_v24 }
   0xb   :  { %87 = vmatpush1.msra.mxu0 %v36_v9 }
   0xc   :  { %88 = vmatprep.subr.mxu0 %v35_v10 }
   0xd   :  { %89 = vmatpush1.msra.mxu0 %v34_v11 }
   0xe   :  { %90 = vmatprep.subr.mxu0 %v33_v12 }
   0xf   :  { %91 = vmatpush1.msra.mxu0 %v32_v13 }
  0x10   :  { %92 = vmatprep.subr.mxu0 %v31_v14 }
  0x11   :  { %93 = vmatpush1.msra.mxu0 %v30_v15 }
  0x12   :  { %94 = vmatprep.subr.mxu0 %v29_v16 }
  0x13   :  { %95 = vmatpush1.msra.mxu0 %v28_v17 }
  0x14   :  { %96 = vmatprep.subr.mxu0 %v27_v18 }
  0x15   :  { %97 = vmatpush1.msra.mxu0 %v26_v19 }
  0x16   :  { %98 = vmatprep.subr.mxu0 %v25_v20 }
  0x17   :  { %99 = vmatpush1.msra.mxu0 %v24_v21 }
  0x18   :  { %7 = vsyncpa [#allocation3], 0  ;;  %100 = vmatprep.subr.mxu0 %v23_v22  ;;  %v20_v26 = vld [vmem:[%s406_s0 + $0x30] sm:$0xff]  ;;  %v19_v27 = vld [vmem:[%s406_s0 + $0x28] sm:$0xff]  ;;  %s189_s29 = smov [#allocation2]   ;;  %vm150_vm0 = vcmask 130048  }
  0x19   :  { %101 = vmatpush1.msra.mxu0 %v22_v23  ;;  %v18_v28 = vld [vmem:[%s406_s0 + $0x20] sm:$0xff]  ;;  %v17_v29 = vld [vmem:[%s406_s0 + $0x18] sm:$0xff]  ;;  %v16_v30 = vld [vmem:[%s406_s0 + $0x10] sm:$0xff]  ;;  %s158_s30 = sshll.u32 %s189_s29, 4  ;;  %s159_s30 = int_to_ptr.vmem [resolvable:$true] %s158_s30 }
  0x1a   :  { %102 = vmatprep.subr.mxu0 %v21_v25  ;;  %v15_v31 = vld [vmem:[%s406_s0 + $0x8] sm:$0xff]  ;;  %v14_v32 = vld [vmem:[%s406_s0] sm:$0xff]  ;;  %v77_v33 = vld [vmem:[%s406_s0 + $0x1f8] sm:$0xff]  ;;  %s167_s3 = scalar_lea.vmem %s159_s30, 256  ;;  %p172_p1 = scmp.lt.s32.totalorder %s159_s30, %s159_s30 }
  0x1b   :  { %103 = vmatpush1.msra.mxu0 %v20_v26  ;;  %v76_v34 = vld [vmem:[%s406_s0 + $0x1f0] sm:$0xff]  ;;  %v75_v35 = vld [vmem:[%s406_s0 + $0x1e8] sm:$0xff]  ;;  %v74_v36 = vld [vmem:[%s406_s0 + $0x1e0] sm:$0xff]  ;;  %p168_p0 = scmp.ne.s32.totalorder %s159_s30, %s167_s3  ;;  %p173_p2 = scmp.lt.s32.totalorder %s167_s3, %s167_s3 }
  0x1c   :  { %104 = vmatprep.subr.mxu0 %v19_v27  ;;  %v73_v37 = vld [vmem:[%s406_s0 + $0x1d8] sm:$0xff]  ;;  %v72_v38 = vld [vmem:[%s406_s0 + $0x1d0] sm:$0xff]  ;;  %v71_v39 = vld [vmem:[%s406_s0 + $0x1c8] sm:$0xff] }
  0x1d   :  { %105 = vmatpush1.msra.mxu0 %v18_v28  ;;  %v70_v40 = vld [vmem:[%s406_s0 + $0x1c0] sm:$0xff]  ;;  %v69_v41 = vld [vmem:[%s406_s0 + $0x1b8] sm:$0xff]  ;;  %v68_v42 = vld [vmem:[%s406_s0 + $0x1b0] sm:$0xff]  ;;  %p174_p3 = por %p173_p2, %p172_p1 }
  0x1e   :  { %106 = vmatprep.subr.mxu0 %v17_v29  ;;  %v67_v43 = vld [vmem:[%s406_s0 + $0x1a8] sm:$0xff]  ;;  %v66_v44 = vld [vmem:[%s406_s0 + $0x1a0] sm:$0xff]  ;;  %v65_v45 = vld [vmem:[%s406_s0 + $0x198] sm:$0xff] }
  0x1f   :  { %107 = vmatpush1.msra.mxu0 %v16_v30  ;;  %v64_v46 = vld [vmem:[%s406_s0 + $0x190] sm:$0xff]  ;;  %v63_v47 = vld [vmem:[%s406_s0 + $0x188] sm:$0xff]  ;;  %v62_v48 = vld [vmem:[%s406_s0 + $0x180] sm:$0xff]  ;;  %p175_p4 = pnand %p174_p3, %p168_p0 }
  0x20   :  { %108 = vmatprep.subr.mxu0 %v15_v31  ;;  %v61_v49 = vld [vmem:[%s406_s0 + $0x178] sm:$0xff]  ;;  %v60_v50 = vld [vmem:[%s406_s0 + $0x170] sm:$0xff]  ;;  %v59_v51 = vld [vmem:[%s406_s0 + $0x168] sm:$0xff] }
  0x21   :  { %109 = vmatpush1.msra.mxu0 %v14_v32  ;;  %v58_v52 = vld [vmem:[%s406_s0 + $0x160] sm:$0xff]  ;;  %v57_v53 = vld [vmem:[%s406_s0 + $0x158] sm:$0xff]  ;;  %v56_v54 = vld [vmem:[%s406_s0 + $0x150] sm:$0xff] }
  0x22   :  { %110 = vmatprep.subr.mxu0 %v77_v33  ;;  %v55_v55 = vld [vmem:[%s406_s0 + $0x148] sm:$0xff]  ;;  %v54_v56 = vld [vmem:[%s406_s0 + $0x140] sm:$0xff]  ;;  %v53_v57 = vld [vmem:[%s406_s0 + $0x138] sm:$0xff] }
  0x23   :  { %111 = vmatpush2.msra.mxu0 %v76_v34  ;;  %v52_v58 = vld [vmem:[%s406_s0 + $0x130] sm:$0xff]  ;;  %v51_v59 = vld [vmem:[%s406_s0 + $0x128] sm:$0xff]  ;;  %v50_v60 = vld [vmem:[%s406_s0 + $0x120] sm:$0xff] }
  0x24   :  { %112 = vmatprep.subr.mxu0 %v75_v35  ;;  %v49_v61 = vld [vmem:[%s406_s0 + $0x118] sm:$0xff]  ;;  %v48_v62 = vld [vmem:[%s406_s0 + $0x110] sm:$0xff]  ;;  %v47_v63 = vld [vmem:[%s406_s0 + $0x108] sm:$0xff] }
  0x25   :  { %113 = vmatpush2.msra.mxu0 %v74_v36  ;;  %v46_v0 = vld [vmem:[%s406_s0 + $0x100] sm:$0xff] }
  0x26   :  { %114 = vmatprep.subr.mxu0 %v73_v37  ;;  %v12_v1 = vld [vmem:[%s407_s1] sm:$0xff] }
  0x27   :  { %115 = vmatpush2.msra.mxu0 %v72_v38 }
  0x28   :  { %116 = vmatprep.subr.mxu0 %v71_v39 }
  0x29   :  { %117 = vmatpush2.msra.mxu0 %v70_v40 }
  0x2a   :  { %118 = vmatprep.subr.mxu0 %v69_v41 }
  0x2b   :  { %119 = vmatpush2.msra.mxu0 %v68_v42 }
  0x2c   :  { %120 = vmatprep.subr.mxu0 %v67_v43 }
  0x2d   :  { %121 = vmatpush2.msra.mxu0 %v66_v44 }
  0x2e   :  { %122 = vmatprep.subr.mxu0 %v65_v45 }
  0x2f   :  { %123 = vmatpush2.msra.mxu0 %v64_v46 }
  0x30   :  { %124 = vmatprep.subr.mxu0 %v63_v47 }
  0x31   :  { %125 = vmatpush2.msra.mxu0 %v62_v48 }
  0x32   :  { %126 = vmatprep.subr.mxu0 %v61_v49 }
  0x33   :  { %127 = vmatpush2.msra.mxu0 %v60_v50 }
  0x34   :  { %128 = vmatprep.subr.mxu0 %v59_v51 }
  0x35   :  { %129 = vmatpush2.msra.mxu0 %v58_v52 }
  0x36   :  { %130 = vmatprep.subr.mxu0 %v57_v53 }
  0x37   :  { %131 = vmatpush2.msra.mxu0 %v56_v54 }
  0x38   :  { %132 = vmatprep.subr.mxu0 %v55_v55 }
  0x39   :  { %133 = vmatpush2.msra.mxu0 %v54_v56 }
  0x3a   :  { %134 = vmatprep.subr.mxu0 %v53_v57 }
  0x3b   :  { %135 = vmatpush2.msra.mxu0 %v52_v58 }
  0x3c   :  { %136 = vmatprep.subr.mxu0 %v51_v59 }
  0x3d   :  { %137 = vmatpush2.msra.mxu0 %v50_v60 }
  0x3e   :  { %138 = vmatprep.subr.mxu0 %v49_v61 }
  0x3f   :  { %139 = vmatpush2.msra.mxu0 %v48_v62 }
  0x40   :  { %140 = vmatprep.subr.mxu0 %v47_v63 }
  0x41   :  { %141 = vmatpush2.msra.mxu0 %v46_v0 }
  0x42   :  { %143 = vmatmul.mubr.f32.vlgmr.msra.gmra.mxu0 %v12_v1 }
 0x102   :  { %v144_v2 = vpop.f32.mrf.mxu0 }
 0x103   :  { %149 = vst [vmem:[#allocation2] sm:$0xff] %v144_v2 }
 0x104   :  { %v146_v3 = vpop.f32.mrf.mxu0 }
 0x105   :  { %151 = vst.msk [vmem:[#allocation2 + $0x8] sm:$0xff] %vm150_vm0, %v146_v3 }
 0x106   :  { %178 = shalt.err (!%p175_p4)
}
 0x107   :  { %161 = dma.vmem_to_hbm [thread:$0]  %s159_s30, 256, %s408_s2, [#allocation3]  }
 0x108   :  { %187 = dma.done.wait [#allocation3], 256  }
 0x109   :  { %188 = vsyncadd [#allocation3], 4294967040 }
 0x10a   :  { %165 = vsyncpa [#allocation3], 1 }

// kernel: tpu_custom_call.1
= control target key start
LH: loop header
LB: loop body
LE: loop exit
PB: predicated region body
PF: predicated region fallthrough
CT: control target
= control target key end

     0   :  { %s406_s0 = inlined_call_operand.vmem [shape: f32[256,144], index: 0, kind: input, shape index: {}]   ;;  %s407_s1 = inlined_call_operand.vmem [shape: f32[8,256], index: 1, kind: input, shape index: {}]   ;;  %s408_s2 = inlined_call_operand.hbm [shape: f32[8,144], index: 2, kind: output, shape index: {}]  }
   0x1   :  { %v45_v0 = vld [vmem:[%s406_s0 + $0xf8] sm:$0xff]  ;;  %v44_v1 = vld [vmem:[%s406_s0 + $0xf0] sm:$0xff]  ;;  %v43_v2 = vld [vmem:[%s406_s0 + $0xe8] sm:$0xff] }
   0x2   :  { %78 = vmatprep.subr.mxu0 %v45_v0  ;;  %v42_v3 = vld [vmem:[%s406_s0 + $0xe0] sm:$0xff]  ;;  %v41_v4 = vld [vmem:[%s406_s0 + $0xd8] sm:$0xff]  ;;  %v40_v5 = vld [vmem:[%s406_s0 + $0xd0] sm:$0xff] }
   0x3   :  { %79 = vmatpush1.msra.mxu0 %v44_v1  ;;  %v39_v6 = vld [vmem:[%s406_s0 + $0xc8] sm:$0xff]  ;;  %v38_v7 = vld [vmem:[%s406_s0 + $0xc0] sm:$0xff]  ;;  %v37_v8 = vld [vmem:[%s406_s0 + $0xb8] sm:$0xff] }
   0x4   :  { %80 = vmatprep.subr.mxu0 %v43_v2  ;;  %v36_v9 = vld [vmem:[%s406_s0 + $0xb0] sm:$0xff]  ;;  %v35_v10 = vld [vmem:[%s406_s0 + $0xa8] sm:$0xff]  ;;  %v34_v11 = vld [vmem:[%s406_s0 + $0xa0] sm:$0xff] }
   0x5   :  { %81 = vmatpush1.msra.mxu0 %v42_v3  ;;  %v33_v12 = vld [vmem:[%s406_s0 + $0x98] sm:$0xff]  ;;  %v32_v13 = vld [vmem:[%s406_s0 + $0x90] sm:$0xff]  ;;  %v31_v14 = vld [vmem:[%s406_s0 + $0x88] sm:$0xff] }
   0x6   :  { %82 = vmatprep.subr.mxu0 %v41_v4  ;;  %v30_v15 = vld [vmem:[%s406_s0 + $0x80] sm:$0xff]  ;;  %v29_v16 = vld [vmem:[%s406_s0 + $0x78] sm:$0xff]  ;;  %v28_v17 = vld [vmem:[%s406_s0 + $0x70] sm:$0xff] }
   0x7   :  { %83 = vmatpush1.msra.mxu0 %v40_v5  ;;  %v27_v18 = vld [vmem:[%s406_s0 + $0x68] sm:$0xff]  ;;  %v26_v19 = vld [vmem:[%s406_s0 + $0x60] sm:$0xff]  ;;  %v25_v20 = vld [vmem:[%s406_s0 + $0x58] sm:$0xff] }
   0x8   :  { %84 = vmatprep.subr.mxu0 %v39_v6  ;;  %v24_v21 = vld [vmem:[%s406_s0 + $0x50] sm:$0xff]  ;;  %v23_v22 = vld [vmem:[%s406_s0 + $0x48] sm:$0xff]  ;;  %v22_v23 = vld [vmem:[%s406_s0 + $0x40] sm:$0xff] }
   0x9   :  { %85 = vmatpush1.msra.mxu0 %v38_v7  ;;  %v13_v24 = vld [vmem:[%s407_s1 + $0x8] sm:$0xff]  ;;  %v21_v25 = vld [vmem:[%s406_s0 + $0x38] sm:$0xff] }
   0xa   :  { %86 = vmatprep.subr.mxu0 %v37_v8  ;;  %142 = vmatprep.mubr.f32.mxu0 %v13_v24 }
   0xb   :  { %87 = vmatpush1.msra.mxu0 %v36_v9 }
   0xc   :  { %88 = vmatprep.subr.mxu0 %v35_v10 }
   0xd   :  { %89 = vmatpush1.msra.mxu0 %v34_v11 }
   0xe   :  { %90 = vmatprep.subr.mxu0 %v33_v12 }
   0xf   :  { %91 = vmatpush1.msra.mxu0 %v32_v13 }
  0x10   :  { %92 = vmatprep.subr.mxu0 %v31_v14 }
  0x11   :  { %93 = vmatpush1.msra.mxu0 %v30_v15 }
  0x12   :  { %94 = vmatprep.subr.mxu0 %v29_v16 }
  0x13   :  { %95 = vmatpush1.msra.mxu0 %v28_v17 }
  0x14   :  { %96 = vmatprep.subr.mxu0 %v27_v18 }
  0x15   :  { %97 = vmatpush1.msra.mxu0 %v26_v19 }
  0x16   :  { %98 = vmatprep.subr.mxu0 %v25_v20 }
  0x17   :  { %99 = vmatpush1.msra.mxu0 %v24_v21 }
  0x18   :  { %7 = vsyncpa [#allocation3], 0  ;;  %100 = vmatprep.subr.mxu0 %v23_v22  ;;  %v20_v26 = vld [vmem:[%s406_s0 + $0x30] sm:$0xff]  ;;  %v19_v27 = vld [vmem:[%s406_s0 + $0x28] sm:$0xff]  ;;  %s189_s29 = smov [#allocation2]   ;;  %vm150_vm0 = vcmask 130048  }
  0x19   :  { %101 = vmatpush1.msra.mxu0 %v22_v23  ;;  %v18_v28 = vld [vmem:[%s406_s0 + $0x20] sm:$0xff]  ;;  %v17_v29 = vld [vmem:[%s406_s0 + $0x18] sm:$0xff]  ;;  %v16_v30 = vld [vmem:[%s406_s0 + $0x10] sm:$0xff]  ;;  %s158_s30 = sshll.u32 %s189_s29, 4  ;;  %s159_s30 = int_to_ptr.vmem [resolvable:$true] %s158_s30 }
  0x1a   :  { %102 = vmatprep.subr.mxu0 %v21_v25  ;;  %v15_v31 = vld [vmem:[%s406_s0 + $0x8] sm:$0xff]  ;;  %v14_v32 = vld [vmem:[%s406_s0] sm:$0xff]  ;;  %v77_v33 = vld [vmem:[%s406_s0 + $0x1f8] sm:$0xff]  ;;  %s167_s3 = scalar_lea.vmem %s159_s30, 256  ;;  %p172_p1 = scmp.lt.s32.totalorder %s159_s30, %s159_s30 }
  0x1b   :  { %103 = vmatpush1.msra.mxu0 %v20_v26  ;;  %v76_v34 = vld [vmem:[%s406_s0 + $0x1f0] sm:$0xff]  ;;  %v75_v35 = vld [vmem:[%s406_s0 + $0x1e8] sm:$0xff]  ;;  %v74_v36 = vld [vmem:[%s406_s0 + $0x1e0] sm:$0xff]  ;;  %p168_p0 = scmp.ne.s32.totalorder %s159_s30, %s167_s3  ;;  %p173_p2 = scmp.lt.s32.totalorder %s167_s3, %s167_s3 }
  0x1c   :  { %104 = vmatprep.subr.mxu0 %v19_v27  ;;  %v73_v37 = vld [vmem:[%s406_s0 + $0x1d8] sm:$0xff]  ;;  %v72_v38 = vld [vmem:[%s406_s0 + $0x1d0] sm:$0xff]  ;;  %v71_v39 = vld [vmem:[%s406_s0 + $0x1c8] sm:$0xff] }
  0x1d   :  { %105 = vmatpush1.msra.mxu0 %v18_v28  ;;  %v70_v40 = vld [vmem:[%s406_s0 + $0x1c0] sm:$0xff]  ;;  %v69_v41 = vld [vmem:[%s406_s0 + $0x1b8] sm:$0xff]  ;;  %v68_v42 = vld [vmem:[%s406_s0 + $0x1b0] sm:$0xff]  ;;  %p174_p3 = por %p173_p2, %p172_p1 }
  0x1e   :  { %106 = vmatprep.subr.mxu0 %v17_v29  ;;  %v67_v43 = vld [vmem:[%s406_s0 + $0x1a8] sm:$0xff]  ;;  %v66_v44 = vld [vmem:[%s406_s0 + $0x1a0] sm:$0xff]  ;;  %v65_v45 = vld [vmem:[%s406_s0 + $0x198] sm:$0xff] }
  0x1f   :  { %107 = vmatpush1.msra.mxu0 %v16_v30  ;;  %v64_v46 = vld [vmem:[%s406_s0 + $0x190] sm:$0xff]  ;;  %v63_v47 = vld [vmem:[%s406_s0 + $0x188] sm:$0xff]  ;;  %v62_v48 = vld [vmem:[%s406_s0 + $0x180] sm:$0xff]  ;;  %p175_p4 = pnand %p174_p3, %p168_p0 }
  0x20   :  { %108 = vmatprep.subr.mxu0 %v15_v31  ;;  %v61_v49 = vld [vmem:[%s406_s0 + $0x178] sm:$0xff]  ;;  %v60_v50 = vld [vmem:[%s406_s0 + $0x170] sm:$0xff]  ;;  %v59_v51 = vld [vmem:[%s406_s0 + $0x168] sm:$0xff] }
  0x21   :  { %109 = vmatpush1.msra.mxu0 %v14_v32  ;;  %v58_v52 = vld [vmem:[%s406_s0 + $0x160] sm:$0xff]  ;;  %v57_v53 = vld [vmem:[%s406_s0 + $0x158] sm:$0xff]  ;;  %v56_v54 = vld [vmem:[%s406_s0 + $0x150] sm:$0xff] }
  0x22   :  { %110 = vmatprep.subr.mxu0 %v77_v33  ;;  %v55_v55 = vld [vmem:[%s406_s0 + $0x148] sm:$0xff]  ;;  %v54_v56 = vld [vmem:[%s406_s0 + $0x140] sm:$0xff]  ;;  %v53_v57 = vld [vmem:[%s406_s0 + $0x138] sm:$0xff] }
  0x23   :  { %111 = vmatpush2.msra.mxu0 %v76_v34  ;;  %v52_v58 = vld [vmem:[%s406_s0 + $0x130] sm:$0xff]  ;;  %v51_v59 = vld [vmem:[%s406_s0 + $0x128] sm:$0xff]  ;;  %v50_v60 = vld [vmem:[%s406_s0 + $0x120] sm:$0xff] }
  0x24   :  { %112 = vmatprep.subr.mxu0 %v75_v35  ;;  %v49_v61 = vld [vmem:[%s406_s0 + $0x118] sm:$0xff]  ;;  %v48_v62 = vld [vmem:[%s406_s0 + $0x110] sm:$0xff]  ;;  %v47_v63 = vld [vmem:[%s406_s0 + $0x108] sm:$0xff] }
  0x25   :  { %113 = vmatpush2.msra.mxu0 %v74_v36  ;;  %v46_v0 = vld [vmem:[%s406_s0 + $0x100] sm:$0xff] }
  0x26   :  { %114 = vmatprep.subr.mxu0 %v73_v37  ;;  %v12_v1 = vld [vmem:[%s407_s1] sm:$0xff] }
  0x27   :  { %115 = vmatpush2.msra.mxu0 %v72_v38 }
  0x28   :  { %116 = vmatprep.subr.mxu0 %v71_v39 }
  0x29   :  { %117 = vmatpush2.msra.mxu0 %v70_v40 }
  0x2a   :  { %118 = vmatprep.subr.mxu0 %v69_v41 }
  0x2b   :  { %119 = vmatpush2.msra.mxu0 %v68_v42 }
  0x2c   :  { %120 = vmatprep.subr.mxu0 %v67_v43 }
  0x2d   :  { %121 = vmatpush2.msra.mxu0 %v66_v44 }
  0x2e   :  { %122 = vmatprep.subr.mxu0 %v65_v45 }
  0x2f   :  { %123 = vmatpush2.msra.mxu0 %v64_v46 }
  0x30   :  { %124 = vmatprep.subr.mxu0 %v63_v47 }
  0x31   :  { %125 = vmatpush2.msra.mxu0 %v62_v48 }
  0x32   :  { %126 = vmatprep.subr.mxu0 %v61_v49 }
  0x33   :  { %127 = vmatpush2.msra.mxu0 %v60_v50 }
  0x34   :  { %128 = vmatprep.subr.mxu0 %v59_v51 }
  0x35   :  { %129 = vmatpush2.msra.mxu0 %v58_v52 }
  0x36   :  { %130 = vmatprep.subr.mxu0 %v57_v53 }
  0x37   :  { %131 = vmatpush2.msra.mxu0 %v56_v54 }
  0x38   :  { %132 = vmatprep.subr.mxu0 %v55_v55 }
  0x39   :  { %133 = vmatpush2.msra.mxu0 %v54_v56 }
  0x3a   :  { %134 = vmatprep.subr.mxu0 %v53_v57 }
  0x3b   :  { %135 = vmatpush2.msra.mxu0 %v52_v58 }
  0x3c   :  { %136 = vmatprep.subr.mxu0 %v51_v59 }
  0x3d   :  { %137 = vmatpush2.msra.mxu0 %v50_v60 }
  0x3e   :  { %138 = vmatprep.subr.mxu0 %v49_v61 }
  0x3f   :  { %139 = vmatpush2.msra.mxu0 %v48_v62 }
  0x40   :  { %140 = vmatprep.subr.mxu0 %v47_v63 }
  0x41   :  { %141 = vmatpush2.msra.mxu0 %v46_v0 }
  0x42   :  { %143 = vmatmul.mubr.f32.vlgmr.msra.gmra.mxu0 %v12_v1 }
 0x102   :  { %v144_v2 = vpop.f32.mrf.mxu0 }
 0x103   :  { %149 = vst [vmem:[#allocation2] sm:$0xff] %v144_v2 }
 0x104   :  { %v146_v3 = vpop.f32.mrf.mxu0 }
 0x105   :  { %151 = vst.msk [vmem:[#allocation2 + $0x8] sm:$0xff] %vm150_vm0, %v146_v3 }
 0x106   :  { %178 = shalt.err (!%p175_p4)
}
 0x107   :  { %161 = dma.vmem_to_hbm [thread:$0]  %s159_s30, 256, %s408_s2, [#allocation3]  }
 0x108   :  { %187 = dma.done.wait [#allocation3], 256  }
 0x109   :  { %188 = vsyncadd [#allocation3], 4294967040 }
 0x10a   :  { %165 = vsyncpa [#allocation3], 1 }

</bundles_post_ra>
